<compile_context>
chip_gen: v5e
topology: v5e:2x2
jax: 0.10.0
libtpu: 0.0.40
codegen_flags: <defaults>
</compile_context>

<pallas_src>
import functools

import jax
import jax.numpy as jnp
from jax.experimental import pallas as pl
from jax.experimental.pallas import tpu as pltpu


def _round_up(x, m):
    return ((x + m - 1) // m) * m


def _linear_relu_kernel(x_ref, w_ref, b_ref, o_ref, *, mxu_bf16):
    # NOTE: when batch % TM != 0, the overhanging rows of the last x block hold unspecified
    # data. That is safe here because every output row depends only on its own input row and
    # Pallas masks the out-of-bounds rows on store. Do NOT add cross-row reductions to this
    # epilogue without revisiting that assumption.
    x = x_ref[...]
    if mxu_bf16:
        # Feed the MXU bf16 operands (multi-pass f32 is 3-8x slower) while keeping the f32
        # accumulation and f32 bias/ReLU epilogue. The VPU cast hides under the tile DMA.
        x = x.astype(jnp.bfloat16)
    acc = jnp.dot(x, w_ref[...], preferred_element_type=jnp.float32)
    acc = acc + b_ref[...].astype(jnp.float32)          # fused bias, (1, N) broadcast
    o_ref[...] = jnp.maximum(acc, 0.0).astype(o_ref.dtype)  # fused ReLU


@functools.partial(jax.jit, static_argnames=("tm", "mxu_bf16", "out_dtype"))
def linear_relu(x, w_t, b, *, tm=1024, mxu_bf16=True, out_dtype=None):
    """y = relu(x @ w_t + b)  ==  PyTorch MyModel forward (Linear(784,256) -> ReLU).

    x:   (batch, 784)  activations (HBM dtype preserved; no wrapper-side cast)
    w_t: (784, 256)    PyTorch weight.T
    b:   (256,)        bias
    """
    batch, k = x.shape
    n = w_t.shape[1]
    out_dtype = x.dtype if out_dtype is None else out_dtype

    if mxu_bf16:
        # Weight is tiny (784x256): convert once, stays resident in VMEM.
        w_t = w_t.astype(jnp.bfloat16)
    b2d = b.reshape(1, n).astype(jnp.float32)

    # Batch (M) tile: multiple of 8 sublanes; no wrapper-side padding -- Pallas masks the
    # ragged last block, so there is no extra HBM pass over x or the output.
    tm_eff = min(tm, _round_up(batch, 8))
    # v7x has two TensorCores; with the batch axis marked "parallel", keep the grid at >= 2
    # steps whenever the batch is big enough to split so both cores get work. (No-op for
    # large batches that already produce several steps.)
    if 2 * 8 < batch <= 2 * tm:
        tm_eff = min(tm_eff, _round_up(pl.cdiv(batch, 2), 8))

    grid = (pl.cdiv(batch, tm_eff),)

    # Consistent scheduler hint: actual HBM bytes / flops for `batch` rows.
    cost = pl.CostEstimate(
        flops=2 * batch * k * n,
        transcendentals=0,
        bytes_accessed=(
            batch * k * jnp.dtype(x.dtype).itemsize          # x (read at its stored dtype)
            + k * n * jnp.dtype(w_t.dtype).itemsize          # weight (bf16 if mxu_bf16)
            + n * 4                                          # bias (f32)
            + batch * n * jnp.dtype(out_dtype).itemsize      # output
        ),
    )

    kernel = functools.partial(_linear_relu_kernel, mxu_bf16=mxu_bf16)

    return pl.pallas_call(
        kernel,
        out_shape=jax.ShapeDtypeStruct((batch, n), out_dtype),
        grid=grid,
        in_specs=[
            pl.BlockSpec((tm_eff, k), lambda i: (i, 0)),   # x tile, full K=784
            # Constant index_map -> fetched once, stays resident in VMEM across grid steps.
            pl.BlockSpec((k, n), lambda i: (0, 0)),        # weight
            pl.BlockSpec((1, n), lambda i: (0, 0)),        # bias
        ],
        out_specs=pl.BlockSpec((tm_eff, n), lambda i: (i, 0)),  # lane-dense (TM, 256)
        compiler_params=pltpu.CompilerParams(
            dimension_semantics=("parallel",),  # shard batch tiles across TCs on v7x
        ),
        cost_estimate=cost,
    )(x, w_t, b2d)


if __name__ == "__main__":
    key = jax.random.PRNGKey(0)
    k1, k2, k3 = jax.random.split(key, 3)

    batch, in_f, out_f = 8, 784, 256
    x = jax.random.normal(k1, (batch, in_f), dtype=jnp.float32)
    # PyTorch stores Linear weight as (out, in); pass its transpose to the kernel.
    w = jax.random.normal(k2, (out_f, in_f), dtype=jnp.float32) * 0.02
    b = jax.random.normal(k3, (out_f,), dtype=jnp.float32) * 0.1

    # Reference: PyTorch MyModel forward == relu(x @ W.T + b)
    y_ref = jnp.maximum(x @ w.T + b, 0.0)

    # Exact path (f32 MXU operands): tight tolerance.
    y_f32 = jax.block_until_ready(linear_relu(x, w.T, b, mxu_bf16=False))
    assert y_f32.shape == (batch, out_f)
    assert jnp.allclose(y_f32, y_ref, atol=1e-4, rtol=1e-4), float(
        jnp.max(jnp.abs(y_f32 - y_ref))
    )

    # Fast path (bf16 MXU operands, f32 accumulation): looser tolerance (expected bf16 loss).
    y_bf16 = jax.block_until_ready(linear_relu(x, w.T, b))
    assert y_bf16.shape == (batch, out_f)
    assert jnp.allclose(y_bf16, y_ref, atol=3e-2, rtol=3e-2), float(
        jnp.max(jnp.abs(y_bf16 - y_ref))
    )

    print("KERNEL_OK")
</pallas_src>

<mosaic_0001>
module attributes {stable_mosaic.version = 11 : i64} {
  func.func @_linear_relu_kernel(%arg0: i32, %arg1: memref<8x784xf32, #tpu.memory_space<vmem>>, %arg2: memref<784x256xf32, #tpu.memory_space<vmem>>, %arg3: memref<1x256xf32, #tpu.memory_space<vmem>>, %arg4: memref<8x256xf32, #tpu.memory_space<vmem>>) attributes {dimension_semantics = [#tpu.dimension_semantics<parallel>], iteration_bounds = array<i64: 1>, scalar_prefetch = 0 : i64, scratch_operands = 0 : i64, tpu.core_type = #tpu.core_type<tc>, window_params = [{transform_indices = @transform_0, window_bounds = array<i64: 8, 784>}, {pipeline_mode = #tpu.pipeline_mode<synchronous>, transform_indices = @transform_1, window_bounds = array<i64: 784, 256>}, {pipeline_mode = #tpu.pipeline_mode<synchronous>, transform_indices = @transform_2, window_bounds = array<i64: 1, 256>}, {transform_indices = @transform_3, window_bounds = array<i64: 8, 256>}]} {
    %c0 = arith.constant 0 : index
    %c0_0 = arith.constant 0 : index
    %0 = vector.load %arg1[%c0, %c0_0] : memref<8x784xf32, #tpu.memory_space<vmem>>, vector<8x784xf32>
    %c0_1 = arith.constant 0 : index
    %c0_2 = arith.constant 0 : index
    %1 = vector.load %arg2[%c0_1, %c0_2] : memref<784x256xf32, #tpu.memory_space<vmem>>, vector<784x256xf32>
    %cst = arith.constant dense<0.000000e+00> : vector<8x256xf32>
    %2 = tpu.matmul %0, %1, %cst {dimension_numbers = #tpu.dot_dimension_numbers<[1], [0], [0], [1], [0, 0, 1, 1], [], []>} : vector<8x784xf32>, vector<784x256xf32>, vector<8x256xf32> -> vector<8x256xf32>
    %c0_3 = arith.constant 0 : index
    %c0_4 = arith.constant 0 : index
    %3 = vector.load %arg3[%c0_3, %c0_4] : memref<1x256xf32, #tpu.memory_space<vmem>>, vector<1x256xf32>
    %4 = vector.broadcast %3 : vector<1x256xf32> to vector<8x256xf32>
    %5 = arith.addf %2, %4 : vector<8x256xf32>
    %cst_5 = arith.constant 0.000000e+00 : f32
    %6 = vector.broadcast %cst_5 : f32 to vector<8x256xf32>
    %7 = arith.maximumf %5, %6 : vector<8x256xf32>
    %c0_6 = arith.constant 0 : index
    %c0_7 = arith.constant 0 : index
    %8 = vector.load %arg4[%c0_6, %c0_7] : memref<8x256xf32, #tpu.memory_space<vmem>>, vector<8x256xf32>
    tpu.vector_store %arg4[%c0_6, %c0_7], %7 {strides = array<i32>} : memref<8x256xf32, #tpu.memory_space<vmem>>, vector<8x256xf32>,
    return
  }
  func.func @transform_0(%arg0: i32) -> (i32, i32) {
    %c0_i32 = arith.constant 0 : i32
    %c0_i32_0 = arith.constant 0 : i32
    return %arg0, %c0_i32 : i32, i32
  }
  func.func @transform_1(%arg0: i32) -> (i32, i32) {
    %c0_i32 = arith.constant 0 : i32
    %c0_i32_0 = arith.constant 0 : i32
    %c0_i32_1 = arith.constant 0 : i32
    return %c0_i32, %c0_i32_0 : i32, i32
  }
  func.func @transform_2(%arg0: i32) -> (i32, i32) {
    %c0_i32 = arith.constant 0 : i32
    %c0_i32_0 = arith.constant 0 : i32
    %c0_i32_1 = arith.constant 0 : i32
    return %c0_i32, %c0_i32_0 : i32, i32
  }
  func.func @transform_3(%arg0: i32) -> (i32, i32) {
    %c0_i32 = arith.constant 0 : i32
    %c0_i32_0 = arith.constant 0 : i32
    return %arg0, %c0_i32 : i32, i32
  }
}

</mosaic_0001>

<bundles_post_ra>
// kernel: linear_relu.1
= control target key start
LH: loop header
LB: loop body
LE: loop exit
PB: predicated region body
PF: predicated region fallthrough
CT: control target
= control target key end

     0   :  { %8 = vsyncpa [#allocation3], 0  ;;  %s712_s0 = inlined_call_operand.hbm [shape: f32[8,784], index: 0, kind: input, shape index: {}]   ;;  %s713_s1 = inlined_call_operand.hbm [shape: f32[784,256], index: 1, kind: input, shape index: {}]   ;;  %s714_s2 = inlined_call_operand.vmem [shape: f32[1,256], index: 2, kind: input, shape index: {}]   ;;  %s715_s3 = inlined_call_operand.hbm [shape: f32[8,256], index: 3, kind: output, shape index: {}]  }
   0x1   :  { %9 = vsyncpa [#allocation6], 0 }
   0x2   :  { %10 = vsyncpa [#allocation4], 0  ;;  %s16_s14 = sshll.u32 %s712_s0, 4  ;;  %s645_s15 = smov [#allocation2]   ;;  %s17_s14 = int_to_ptr.hbm [resolvable:$true] %s16_s14 }
   0x3   :  { %s18_s16 = sshll.u32 %s645_s15, 4  ;;  %s26_s19 = sshll.u32 %s713_s1, 4  ;;  %s19_s16 = int_to_ptr.vmem [resolvable:$true] %s18_s16  ;;  %s27_s19 = int_to_ptr.hbm [resolvable:$true] %s26_s19 }
   0x4   :  { %21 = dma.hbm_to_vmem [thread:$0]  %s17_s14, 896, %s19_s16, [#allocation3]  }
   0x5   :  { %s646_s20 = smov [#allocation5]   ;;  %s647_s22 = smov 256  }
   0x6   :  { %s28_s21 = sshll.u32 %s646_s20, 4  ;;  %s648_s23 = smov 16   ;;  %s29_s21 = int_to_ptr.vmem [resolvable:$true] %s28_s21 }
   0x7   :  { %34 = dma.hbm_to_vmem [thread:$0]  %s27_s19, 25088, %s29_s21, [#allocation6], %s647_s22, %s647_s22, %s648_s23  }
   0x8   :  { %639 = dma.done.wait [#allocation3], 896  }
   0x9   :  { %640 = vsyncadd [#allocation3], 4294966400 }
   0xa   :  { %641 = dma.done.wait [#allocation6], 25088  }
   0xb   :  { %642 = vsyncadd [#allocation6], 4294942208  ;;  %v82_v0 = vld [vmem:[#allocation5 + $0xf0] sm:$0xff]  ;;  %v80_v3 = vld [vmem:[#allocation5 + $0xe0] sm:$0xff]  ;;  %vm254_vm0 = vcmask 130048   ;;  %s549_s27 = sshll.u32 %s715_s3, 4  ;;  %s550_s27 = int_to_ptr.hbm [resolvable:$true] %s549_s27 }
   0xc   :  { %v146_v1 = vld [vmem:[#allocation5 + $0x2f0] sm:$0xff]  ;;  %258 = vmatpush.msra.mxu0 %v82_v0  ;;  %v144_v5 = vld [vmem:[#allocation5 + $0x2e0] sm:$0xff] }
   0xd   :  { %v178_v2 = vld [vmem:[#allocation5 + $0x3f0] sm:$0xff]  ;;  %298 = vmatpush.msra.mxu2 %v146_v1  ;;  %v176_v6 = vld [vmem:[#allocation5 + $0x3e0] sm:$0xff] }
   0xe   :  { %v114_v4 = vld [vmem:[#allocation5 + $0x1f0] sm:$0xff]  ;;  %318 = vmatpush.msra.mxu3 %v178_v2  ;;  %v112_v8 = vld [vmem:[#allocation5 + $0x1e0] sm:$0xff]  ;;  %259 = vmatpush.msra.mxu0 %v80_v3  ;;  %v83_v2 = vld [vmem:[#allocation5 + $0xf8] sm:$0xff] }
   0xf   :  { %278 = vmatpush.msra.mxu1 %v114_v4  ;;  %v78_v7 = vld [vmem:[#allocation5 + $0xd0] sm:$0xff]  ;;  %299 = vmatpush.msra.mxu2 %v144_v5  ;;  %v76_v11 = vld [vmem:[#allocation5 + $0xc0] sm:$0xff] }
  0x10   :  { %v142_v9 = vld [vmem:[#allocation5 + $0x2d0] sm:$0xff]  ;;  %319 = vmatpush.msra.mxu3 %v176_v6  ;;  %v140_v13 = vld [vmem:[#allocation5 + $0x2c0] sm:$0xff]  ;;  %260 = vmatpush.msra.mxu0 %v78_v7  ;;  %v676_v6 = vld [vmem:[#allocation2 + $0x10] sm:$0xff] }
  0x11   :  { %v174_v10 = vld [vmem:[#allocation5 + $0x3d0] sm:$0xff]  ;;  %279 = vmatpush.msra.mxu1 %v112_v8  ;;  %300 = vmatpush.msra.mxu2 %v142_v9  ;;  %v172_v14 = vld [vmem:[#allocation5 + $0x3c0] sm:$0xff]  ;;  %v81_v7 = vld [vmem:[#allocation5 + $0xe8] sm:$0xff] }
  0x12   :  { %v110_v12 = vld [vmem:[#allocation5 + $0x1d0] sm:$0xff]  ;;  %v108_v15 = vld [vmem:[#allocation5 + $0x1c0] sm:$0xff]  ;;  %320 = vmatpush.msra.mxu3 %v174_v10  ;;  %261 = vmatpush.msra.mxu0 %v76_v11  ;;  %v115_v8 = vld [vmem:[#allocation5 + $0x1f8] sm:$0xff] }
  0x13   :  { %280 = vmatpush.msra.mxu1 %v110_v12  ;;  %v74_v16 = vld [vmem:[#allocation5 + $0xb0] sm:$0xff]  ;;  %301 = vmatpush.msra.mxu2 %v140_v13  ;;  %v72_v20 = vld [vmem:[#allocation5 + $0xa0] sm:$0xff]  ;;  %v678_v11 = vld [vmem:[#allocation2] sm:$0xff] }
  0x14   :  { %v138_v17 = vld [vmem:[#allocation5 + $0x2b0] sm:$0xff]  ;;  %321 = vmatpush.msra.mxu3 %v172_v14  ;;  %v136_v21 = vld [vmem:[#allocation5 + $0x2a0] sm:$0xff]  ;;  %262 = vmatpush.msra.mxu0 %v74_v16  ;;  %v113_v13 = vld [vmem:[#allocation5 + $0x1e8] sm:$0xff] }
  0x15   :  { %v170_v18 = vld [vmem:[#allocation5 + $0x3b0] sm:$0xff]  ;;  %281 = vmatpush.msra.mxu1 %v108_v15  ;;  %302 = vmatpush.msra.mxu2 %v138_v17  ;;  %v168_v22 = vld [vmem:[#allocation5 + $0x3a0] sm:$0xff]  ;;  %v79_v14 = vld [vmem:[#allocation5 + $0xd8] sm:$0xff] }
  0x16   :  { %v106_v19 = vld [vmem:[#allocation5 + $0x1b0] sm:$0xff]  ;;  %v104_v23 = vld [vmem:[#allocation5 + $0x1a0] sm:$0xff]  ;;  %322 = vmatpush.msra.mxu3 %v170_v18  ;;  %263 = vmatpush.msra.mxu0 %v72_v20  ;;  %v111_v17 = vld [vmem:[#allocation5 + $0x1d8] sm:$0xff] }
  0x17   :  { %282 = vmatpush.msra.mxu1 %v106_v19  ;;  %v70_v24 = vld [vmem:[#allocation5 + $0x90] sm:$0xff]  ;;  %303 = vmatpush.msra.mxu2 %v136_v21  ;;  %v68_v28 = vld [vmem:[#allocation5 + $0x80] sm:$0xff]  ;;  %v77_v19 = vld [vmem:[#allocation5 + $0xc8] sm:$0xff] }
  0x18   :  { %v134_v25 = vld [vmem:[#allocation5 + $0x290] sm:$0xff]  ;;  %323 = vmatpush.msra.mxu3 %v168_v22  ;;  %v132_v29 = vld [vmem:[#allocation5 + $0x280] sm:$0xff]  ;;  %264 = vmatpush.msra.mxu0 %v70_v24  ;;  %v75_v22 = vld [vmem:[#allocation5 + $0xb8] sm:$0xff] }
  0x19   :  { %v166_v26 = vld [vmem:[#allocation5 + $0x390] sm:$0xff]  ;;  %283 = vmatpush.msra.mxu1 %v104_v23  ;;  %304 = vmatpush.msra.mxu2 %v134_v25  ;;  %v164_v30 = vld [vmem:[#allocation5 + $0x380] sm:$0xff]  ;;  %v109_v23 = vld [vmem:[#allocation5 + $0x1c8] sm:$0xff] }
  0x1a   :  { %v102_v27 = vld [vmem:[#allocation5 + $0x190] sm:$0xff]  ;;  %v100_v31 = vld [vmem:[#allocation5 + $0x180] sm:$0xff]  ;;  %324 = vmatpush.msra.mxu3 %v166_v26  ;;  %265 = vmatpush.msra.mxu0 %v68_v28  ;;  %v73_v26 = vld [vmem:[#allocation5 + $0xa8] sm:$0xff] }
  0x1b   :  { %284 = vmatpush.msra.mxu1 %v102_v27  ;;  %v66_v32 = vld [vmem:[#allocation5 + $0x70] sm:$0xff]  ;;  %305 = vmatpush.msra.mxu2 %v132_v29  ;;  %v64_v36 = vld [vmem:[#allocation5 + $0x60] sm:$0xff]  ;;  %v107_v27 = vld [vmem:[#allocation5 + $0x1b8] sm:$0xff] }
  0x1c   :  { %v130_v33 = vld [vmem:[#allocation5 + $0x270] sm:$0xff]  ;;  %325 = vmatpush.msra.mxu3 %v164_v30  ;;  %v128_v37 = vld [vmem:[#allocation5 + $0x260] sm:$0xff]  ;;  %266 = vmatpush.msra.mxu0 %v66_v32  ;;  %v71_v30 = vld [vmem:[#allocation5 + $0x98] sm:$0xff] }
  0x1d   :  { %v162_v34 = vld [vmem:[#allocation5 + $0x370] sm:$0xff]  ;;  %285 = vmatpush.msra.mxu1 %v100_v31  ;;  %306 = vmatpush.msra.mxu2 %v130_v33  ;;  %v160_v38 = vld [vmem:[#allocation5 + $0x360] sm:$0xff]  ;;  %v105_v31 = vld [vmem:[#allocation5 + $0x1a8] sm:$0xff] }
  0x1e   :  { %v98_v35 = vld [vmem:[#allocation5 + $0x170] sm:$0xff]  ;;  %v96_v39 = vld [vmem:[#allocation5 + $0x160] sm:$0xff]  ;;  %326 = vmatpush.msra.mxu3 %v162_v34  ;;  %267 = vmatpush.msra.mxu0 %v64_v36  ;;  %v69_v34 = vld [vmem:[#allocation5 + $0x88] sm:$0xff] }
  0x1f   :  { %286 = vmatpush.msra.mxu1 %v98_v35  ;;  %v62_v40 = vld [vmem:[#allocation5 + $0x50] sm:$0xff]  ;;  %307 = vmatpush.msra.mxu2 %v128_v37  ;;  %v60_v44 = vld [vmem:[#allocation5 + $0x40] sm:$0xff]  ;;  %v103_v35 = vld [vmem:[#allocation5 + $0x198] sm:$0xff] }
  0x20   :  { %v126_v41 = vld [vmem:[#allocation5 + $0x250] sm:$0xff]  ;;  %327 = vmatpush.msra.mxu3 %v160_v38  ;;  %v124_v45 = vld [vmem:[#allocation5 + $0x240] sm:$0xff]  ;;  %268 = vmatpush.msra.mxu0 %v62_v40  ;;  %v67_v38 = vld [vmem:[#allocation5 + $0x78] sm:$0xff] }
  0x21   :  { %v158_v42 = vld [vmem:[#allocation5 + $0x350] sm:$0xff]  ;;  %287 = vmatpush.msra.mxu1 %v96_v39  ;;  %308 = vmatpush.msra.mxu2 %v126_v41  ;;  %v156_v46 = vld [vmem:[#allocation5 + $0x340] sm:$0xff]  ;;  %v101_v39 = vld [vmem:[#allocation5 + $0x188] sm:$0xff] }
  0x22   :  { %v94_v43 = vld [vmem:[#allocation5 + $0x150] sm:$0xff]  ;;  %v92_v47 = vld [vmem:[#allocation5 + $0x140] sm:$0xff]  ;;  %328 = vmatpush.msra.mxu3 %v158_v42  ;;  %269 = vmatpush.msra.mxu0 %v60_v44  ;;  %v65_v42 = vld [vmem:[#allocation5 + $0x68] sm:$0xff] }
  0x23   :  { %288 = vmatpush.msra.mxu1 %v94_v43  ;;  %v58_v48 = vld [vmem:[#allocation5 + $0x30] sm:$0xff]  ;;  %309 = vmatpush.msra.mxu2 %v124_v45  ;;  %v56_v52 = vld [vmem:[#allocation5 + $0x20] sm:$0xff]  ;;  %v99_v43 = vld [vmem:[#allocation5 + $0x178] sm:$0xff] }
  0x24   :  { %v122_v49 = vld [vmem:[#allocation5 + $0x230] sm:$0xff]  ;;  %329 = vmatpush.msra.mxu3 %v156_v46  ;;  %v120_v53 = vld [vmem:[#allocation5 + $0x220] sm:$0xff]  ;;  %270 = vmatpush.msra.mxu0 %v58_v48  ;;  %v63_v46 = vld [vmem:[#allocation5 + $0x58] sm:$0xff] }
  0x25   :  { %v154_v50 = vld [vmem:[#allocation5 + $0x330] sm:$0xff]  ;;  %289 = vmatpush.msra.mxu1 %v92_v47  ;;  %310 = vmatpush.msra.mxu2 %v122_v49  ;;  %v152_v54 = vld [vmem:[#allocation5 + $0x320] sm:$0xff]  ;;  %v97_v47 = vld [vmem:[#allocation5 + $0x168] sm:$0xff] }
  0x26   :  { %v90_v51 = vld [vmem:[#allocation5 + $0x130] sm:$0xff]  ;;  %v88_v55 = vld [vmem:[#allocation5 + $0x120] sm:$0xff]  ;;  %330 = vmatpush.msra.mxu3 %v154_v50  ;;  %271 = vmatpush.msra.mxu0 %v56_v52  ;;  %v61_v50 = vld [vmem:[#allocation5 + $0x48] sm:$0xff] }
  0x27   :  { %290 = vmatpush.msra.mxu1 %v90_v51  ;;  %v54_v56 = vld [vmem:[#allocation5 + $0x10] sm:$0xff]  ;;  %311 = vmatpush.msra.mxu2 %v120_v53  ;;  %v52_v60 = vld [vmem:[#allocation5] sm:$0xff]  ;;  %v95_v51 = vld [vmem:[#allocation5 + $0x158] sm:$0xff] }
  0x28   :  { %v118_v57 = vld [vmem:[#allocation5 + $0x210] sm:$0xff]  ;;  %331 = vmatpush.msra.mxu3 %v152_v54  ;;  %v116_v61 = vld [vmem:[#allocation5 + $0x200] sm:$0xff]  ;;  %272 = vmatpush.msra.mxu0 %v54_v56  ;;  %v59_v54 = vld [vmem:[#allocation5 + $0x38] sm:$0xff] }
  0x29   :  { %v150_v58 = vld [vmem:[#allocation5 + $0x310] sm:$0xff]  ;;  %291 = vmatpush.msra.mxu1 %v88_v55  ;;  %312 = vmatpush.msra.mxu2 %v118_v57  ;;  %v148_v62 = vld [vmem:[#allocation5 + $0x300] sm:$0xff]  ;;  %v93_v55 = vld [vmem:[#allocation5 + $0x148] sm:$0xff] }
  0x2a   :  { %v86_v59 = vld [vmem:[#allocation5 + $0x110] sm:$0xff]  ;;  %332 = vmatpush.msra.mxu3 %v150_v58  ;;  %v84_v1 = vld [vmem:[#allocation5 + $0x100] sm:$0xff]  ;;  %273 = vmatpush.msra.mxu0 %v52_v60  ;;  %v57_v58 = vld [vmem:[#allocation5 + $0x28] sm:$0xff] }
  0x2b   :  { %v210_v63 = vld [vmem:[#allocation5 + $0x4f0] sm:$0xff]  ;;  %292 = vmatpush.msra.mxu1 %v86_v59  ;;  %313 = vmatpush.msra.mxu2 %v116_v61  ;;  %v208_v3 = vld [vmem:[#allocation5 + $0x4e0] sm:$0xff]  ;;  %v91_v59 = vld [vmem:[#allocation5 + $0x138] sm:$0xff] }
  0x2c   :  { %v246_v0 = vld [vmem:[#allocation5 + $0x610] sm:$0xff]  ;;  %333 = vmatpush.msra.mxu3 %v148_v62  ;;  %338 = vmatpush.msrb.mxu0 %v210_v63  ;;  %v244_v5 = vld [vmem:[#allocation5 + $0x600] sm:$0xff]  ;;  %v688_v62 = vld [vmem:[#allocation2 + $0x30] sm:$0xff] }
  0x2d   :  { %v242_v4 = vld [vmem:[#allocation5 + $0x5f0] sm:$0xff]  ;;  %392 = vmatpush.msrb.mxu2 %v246_v0  ;;  %293 = vmatpush.msra.mxu1 %v84_v1  ;;  %v240_v10 = vld [vmem:[#allocation5 + $0x5e0] sm:$0xff]  ;;  %v55_v63 = vld [vmem:[#allocation5 + $0x18] sm:$0xff] }
  0x2e   :  { %398 = vmatpush.msrb.mxu3 %v83_v2  ;;  %339 = vmatpush.msrb.mxu0 %v208_v3  ;;  %v206_v9 = vld [vmem:[#allocation5 + $0x4d0] sm:$0xff]  ;;  %v681_v12 = vld [vmem:[#allocation2 + $0x18] sm:$0xff]  ;;  %v89_v0 = vld [vmem:[#allocation5 + $0x128] sm:$0xff] }
  0x2f   :  { %358 = vmatpush.msrb.mxu1 %v242_v4  ;;  %393 = vmatpush.msrb.mxu2 %v244_v5  ;;  %v204_v15 = vld [vmem:[#allocation5 + $0x4c0] sm:$0xff]  ;;  %v238_v16 = vld [vmem:[#allocation5 + $0x5d0] sm:$0xff]  ;;  %v690_v3 = vld [vmem:[#allocation2 + $0x20] sm:$0xff] }
  0x30   :  { %314 = vmatmul.f32.vlgmr.msra.gmra.mxu2 %v676_v6  ;;  %399 = vmatpush.msrb.mxu3 %v81_v7  ;;  %v685_v18 = vld [vmem:[#allocation2 + $0x8] sm:$0xff]  ;;  %v236_v21 = vld [vmem:[#allocation5 + $0x5c0] sm:$0xff]  ;;  %v53_v4 = vld [vmem:[#allocation5 + $0x8] sm:$0xff] }
  0x31   :  { %418 = vmatpush.msra.mxu2 %v115_v8  ;;  %340 = vmatpush.msrb.mxu0 %v206_v9  ;;  %v202_v20 = vld [vmem:[#allocation5 + $0x4b0] sm:$0xff]  ;;  %v200_v24 = vld [vmem:[#allocation5 + $0x4a0] sm:$0xff]  ;;  %v87_v5 = vld [vmem:[#allocation5 + $0x118] sm:$0xff] }
  0x32   :  { %359 = vmatpush.msrb.mxu1 %v240_v10  ;;  %274 = vmatmul.f32.vlgmr.msra.gmra.mxu0 %v678_v11  ;;  %v234_v25 = vld [vmem:[#allocation5 + $0x5b0] sm:$0xff]  ;;  %v232_v29 = vld [vmem:[#allocation5 + $0x5a0] sm:$0xff]  ;;  %v211_v8 = vld [vmem:[#allocation5 + $0x4f8] sm:$0xff] }
  0x33   :  { %334 = vmatmul.f32.vlgmr.msra.gmra.mxu3 %v681_v12  ;;  %419 = vmatpush.msra.mxu2 %v113_v13  ;;  %v198_v28 = vld [vmem:[#allocation5 + $0x490] sm:$0xff]  ;;  %v196_v32 = vld [vmem:[#allocation5 + $0x480] sm:$0xff]  ;;  %v85_v10 = vld [vmem:[#allocation5 + $0x108] sm:$0xff] }
  0x34   :  { %400 = vmatpush.msrb.mxu3 %v79_v14  ;;  %341 = vmatpush.msrb.mxu0 %v204_v15  ;;  %v230_v33 = vld [vmem:[#allocation5 + $0x590] sm:$0xff]  ;;  %v228_v37 = vld [vmem:[#allocation5 + $0x580] sm:$0xff]  ;;  %v147_v13 = vld [vmem:[#allocation5 + $0x2f8] sm:$0xff] }
  0x35   :  { %360 = vmatpush.msrb.mxu1 %v238_v16  ;;  %420 = vmatpush.msra.mxu2 %v111_v17  ;;  %v194_v36 = vld [vmem:[#allocation5 + $0x470] sm:$0xff]  ;;  %v192_v40 = vld [vmem:[#allocation5 + $0x460] sm:$0xff]  ;;  %v209_v14 = vld [vmem:[#allocation5 + $0x4e8] sm:$0xff] }
  0x36   :  { %294 = vmatmul.f32.vlgmr.msra.gmra.mxu1 %v685_v18  ;;  %401 = vmatpush.msrb.mxu3 %v77_v19  ;;  %v226_v41 = vld [vmem:[#allocation5 + $0x570] sm:$0xff]  ;;  %v224_v45 = vld [vmem:[#allocation5 + $0x560] sm:$0xff]  ;;  %v243_v15 = vld [vmem:[#allocation5 + $0x5f8] sm:$0xff] }
  0x37   :  { %342 = vmatpush.msrb.mxu0 %v202_v20  ;;  %361 = vmatpush.msrb.mxu1 %v236_v21  ;;  %v190_v44 = vld [vmem:[#allocation5 + $0x450] sm:$0xff]  ;;  %v188_v48 = vld [vmem:[#allocation5 + $0x440] sm:$0xff]  ;;  %v179_v16 = vld [vmem:[#allocation5 + $0x3f8] sm:$0xff] }
  0x38   :  { %402 = vmatpush.msrb.mxu3 %v75_v22  ;;  %421 = vmatpush.msra.mxu2 %v109_v23  ;;  %v222_v49 = vld [vmem:[#allocation5 + $0x550] sm:$0xff]  ;;  %v220_v53 = vld [vmem:[#allocation5 + $0x540] sm:$0xff]  ;;  %v145_v17 = vld [vmem:[#allocation5 + $0x2e8] sm:$0xff] }
  0x39   :  { %343 = vmatpush.msrb.mxu0 %v200_v24  ;;  %362 = vmatpush.msrb.mxu1 %v234_v25  ;;  %v186_v52 = vld [vmem:[#allocation5 + $0x430] sm:$0xff]  ;;  %v184_v56 = vld [vmem:[#allocation5 + $0x420] sm:$0xff]  ;;  %v207_v19 = vld [vmem:[#allocation5 + $0x4d8] sm:$0xff] }
  0x3a   :  { %403 = vmatpush.msrb.mxu3 %v73_v26  ;;  %422 = vmatpush.msra.mxu2 %v107_v27  ;;  %v218_v57 = vld [vmem:[#allocation5 + $0x530] sm:$0xff]  ;;  %v216_v61 = vld [vmem:[#allocation5 + $0x520] sm:$0xff]  ;;  %v241_v20 = vld [vmem:[#allocation5 + $0x5e8] sm:$0xff] }
  0x3b   :  { %344 = vmatpush.msrb.mxu0 %v198_v28  ;;  %363 = vmatpush.msrb.mxu1 %v232_v29  ;;  %v182_v60 = vld [vmem:[#allocation5 + $0x410] sm:$0xff]  ;;  %v180_v1 = vld [vmem:[#allocation5 + $0x400] sm:$0xff]  ;;  %v177_v21 = vld [vmem:[#allocation5 + $0x3e8] sm:$0xff] }
  0x3c   :  { %404 = vmatpush.msrb.mxu3 %v71_v30  ;;  %423 = vmatpush.msra.mxu2 %v105_v31  ;;  %v214_v2 = vld [vmem:[#allocation5 + $0x510] sm:$0xff]  ;;  %v212_v7 = vld [vmem:[#allocation5 + $0x500] sm:$0xff]  ;;  %v143_v22 = vld [vmem:[#allocation5 + $0x2d8] sm:$0xff] }
  0x3d   :  { %345 = vmatpush.msrb.mxu0 %v196_v32  ;;  %364 = vmatpush.msrb.mxu1 %v230_v33  ;;  %v695_v9 = vld [vmem:[#allocation2 + $0x28] sm:$0xff]  ;;  %v205_v23 = vld [vmem:[#allocation5 + $0x4c8] sm:$0xff]  ;;  %v239_v24 = vld [vmem:[#allocation5 + $0x5d8] sm:$0xff] }
  0x3e   :  { %405 = vmatpush.msrb.mxu3 %v69_v34  ;;  %424 = vmatpush.msra.mxu2 %v103_v35  ;;  %v175_v25 = vld [vmem:[#allocation5 + $0x3d8] sm:$0xff]  ;;  %v141_v26 = vld [vmem:[#allocation5 + $0x2c8] sm:$0xff] }
  0x3f   :  { %346 = vmatpush.msrb.mxu0 %v194_v36  ;;  %365 = vmatpush.msrb.mxu1 %v228_v37  ;;  %v203_v27 = vld [vmem:[#allocation5 + $0x4b8] sm:$0xff]  ;;  %v237_v28 = vld [vmem:[#allocation5 + $0x5c8] sm:$0xff] }
  0x40   :  { %406 = vmatpush.msrb.mxu3 %v67_v38  ;;  %425 = vmatpush.msra.mxu2 %v101_v39  ;;  %v173_v29 = vld [vmem:[#allocation5 + $0x3c8] sm:$0xff]  ;;  %v139_v30 = vld [vmem:[#allocation5 + $0x2b8] sm:$0xff] }
  0x41   :  { %347 = vmatpush.msrb.mxu0 %v192_v40  ;;  %366 = vmatpush.msrb.mxu1 %v226_v41  ;;  %v201_v31 = vld [vmem:[#allocation5 + $0x4a8] sm:$0xff]  ;;  %v235_v32 = vld [vmem:[#allocation5 + $0x5b8] sm:$0xff] }
  0x42   :  { %407 = vmatpush.msrb.mxu3 %v65_v42  ;;  %426 = vmatpush.msra.mxu2 %v99_v43  ;;  %v171_v33 = vld [vmem:[#allocation5 + $0x3b8] sm:$0xff]  ;;  %v137_v34 = vld [vmem:[#allocation5 + $0x2a8] sm:$0xff] }
  0x43   :  { %348 = vmatpush.msrb.mxu0 %v190_v44  ;;  %367 = vmatpush.msrb.mxu1 %v224_v45  ;;  %v199_v35 = vld [vmem:[#allocation5 + $0x498] sm:$0xff]  ;;  %v233_v36 = vld [vmem:[#allocation5 + $0x5a8] sm:$0xff] }
  0x44   :  { %408 = vmatpush.msrb.mxu3 %v63_v46  ;;  %427 = vmatpush.msra.mxu2 %v97_v47  ;;  %v169_v37 = vld [vmem:[#allocation5 + $0x3a8] sm:$0xff]  ;;  %v135_v38 = vld [vmem:[#allocation5 + $0x298] sm:$0xff] }
  0x45   :  { %349 = vmatpush.msrb.mxu0 %v188_v48  ;;  %368 = vmatpush.msrb.mxu1 %v222_v49  ;;  %v197_v39 = vld [vmem:[#allocation5 + $0x488] sm:$0xff]  ;;  %v231_v40 = vld [vmem:[#allocation5 + $0x598] sm:$0xff] }
  0x46   :  { %409 = vmatpush.msrb.mxu3 %v61_v50  ;;  %428 = vmatpush.msra.mxu2 %v95_v51  ;;  %v167_v41 = vld [vmem:[#allocation5 + $0x398] sm:$0xff]  ;;  %v133_v42 = vld [vmem:[#allocation5 + $0x288] sm:$0xff] }
  0x47   :  { %350 = vmatpush.msrb.mxu0 %v186_v52  ;;  %369 = vmatpush.msrb.mxu1 %v220_v53  ;;  %v195_v43 = vld [vmem:[#allocation5 + $0x478] sm:$0xff]  ;;  %v229_v44 = vld [vmem:[#allocation5 + $0x588] sm:$0xff] }
  0x48   :  { %410 = vmatpush.msrb.mxu3 %v59_v54  ;;  %429 = vmatpush.msra.mxu2 %v93_v55  ;;  %v165_v45 = vld [vmem:[#allocation5 + $0x388] sm:$0xff]  ;;  %v131_v46 = vld [vmem:[#allocation5 + $0x278] sm:$0xff] }
  0x49   :  { %351 = vmatpush.msrb.mxu0 %v184_v56  ;;  %370 = vmatpush.msrb.mxu1 %v218_v57  ;;  %v193_v47 = vld [vmem:[#allocation5 + $0x468] sm:$0xff]  ;;  %v227_v48 = vld [vmem:[#allocation5 + $0x578] sm:$0xff] }
  0x4a   :  { %411 = vmatpush.msrb.mxu3 %v57_v58  ;;  %430 = vmatpush.msra.mxu2 %v91_v59  ;;  %v163_v49 = vld [vmem:[#allocation5 + $0x378] sm:$0xff]  ;;  %v129_v50 = vld [vmem:[#allocation5 + $0x268] sm:$0xff] }
  0x4b   :  { %352 = vmatpush.msrb.mxu0 %v182_v60  ;;  %371 = vmatpush.msrb.mxu1 %v216_v61  ;;  %v191_v51 = vld [vmem:[#allocation5 + $0x458] sm:$0xff]  ;;  %v225_v52 = vld [vmem:[#allocation5 + $0x568] sm:$0xff] }
  0x4c   :  { %560 = vmatmul.msk.f32.vlgmr.msrb.gmra.mxu2 %vm254_vm0, %v688_v62  ;;  %412 = vmatpush.msrb.mxu3 %v55_v63  ;;  %v161_v53 = vld [vmem:[#allocation5 + $0x368] sm:$0xff]  ;;  %v127_v54 = vld [vmem:[#allocation5 + $0x258] sm:$0xff] }
  0x4d   :  { %431 = vmatpush.msra.mxu2 %v89_v0  ;;  %353 = vmatpush.msrb.mxu0 %v180_v1  ;;  %v189_v55 = vld [vmem:[#allocation5 + $0x448] sm:$0xff]  ;;  %v223_v56 = vld [vmem:[#allocation5 + $0x558] sm:$0xff] }
  0x4e   :  { %372 = vmatpush.msrb.mxu1 %v214_v2  ;;  %354 = vmatmul.f32.vlgmr.msrb.gmra.mxu0 %v690_v3  ;;  %v125_v57 = vld [vmem:[#allocation5 + $0x248] sm:$0xff]  ;;  %v159_v58 = vld [vmem:[#allocation5 + $0x358] sm:$0xff] }
  0x4f   :  { %413 = vmatpush.msrb.mxu3 %v53_v4  ;;  %432 = vmatpush.msra.mxu2 %v87_v5  ;;  %v187_v59 = vld [vmem:[#allocation5 + $0x438] sm:$0xff]  ;;  %v221_v60 = vld [vmem:[#allocation5 + $0x548] sm:$0xff] }
  0x50   :  { %373 = vmatpush.msrb.mxu1 %v212_v7  ;;  %438 = vmatpush.msra.mxu0 %v147_v13  ;;  %v123_v61 = vld [vmem:[#allocation5 + $0x238] sm:$0xff]  ;;  %v157_v63 = vld [vmem:[#allocation5 + $0x348] sm:$0xff] }
  0x51   :  { %478 = vmatpush.msra.mxu3 %v211_v8  ;;  %374 = vmatmul.f32.vlgmr.msrb.gmra.mxu1 %v695_v9  ;;  %v185_v0 = vld [vmem:[#allocation5 + $0x428] sm:$0xff]  ;;  %v219_v1 = vld [vmem:[#allocation5 + $0x538] sm:$0xff] }
  0x52   :  { %433 = vmatpush.msra.mxu2 %v85_v10  ;;  %458 = vmatpush.msra.mxu1 %v179_v16  ;;  %v121_v2 = vld [vmem:[#allocation5 + $0x228] sm:$0xff]  ;;  %v155_v4 = vld [vmem:[#allocation5 + $0x338] sm:$0xff] }
  0x53   :  { %479 = vmatpush.msra.mxu3 %v209_v14  ;;  %439 = vmatpush.msra.mxu0 %v145_v17  ;;  %v183_v5 = vld [vmem:[#allocation5 + $0x418] sm:$0xff]  ;;  %v217_v7 = vld [vmem:[#allocation5 + $0x528] sm:$0xff] }
  0x54   :  { %498 = vmatpush.msrb.mxu2 %v243_v15  ;;  %459 = vmatpush.msra.mxu1 %v177_v21  ;;  %v119_v8 = vld [vmem:[#allocation5 + $0x218] sm:$0xff]  ;;  %v181_v10 = vld [vmem:[#allocation5 + $0x408] sm:$0xff] }
  0x55   :  { %480 = vmatpush.msra.mxu3 %v207_v19  ;;  %440 = vmatpush.msra.mxu0 %v143_v22  ;;  %v215_v13 = vld [vmem:[#allocation5 + $0x518] sm:$0xff]  ;;  %v117_v14 = vld [vmem:[#allocation5 + $0x208] sm:$0xff] }
  0x56   :  { %499 = vmatpush.msrb.mxu2 %v241_v20  ;;  %460 = vmatpush.msra.mxu1 %v175_v25  ;;  %v151_v15 = vld [vmem:[#allocation5 + $0x318] sm:$0xff]  ;;  %v149_v17 = vld [vmem:[#allocation5 + $0x308] sm:$0xff] }
  0x57   :  { %481 = vmatpush.msra.mxu3 %v205_v23  ;;  %441 = vmatpush.msra.mxu0 %v141_v26  ;;  %v247_v16 = vld [vmem:[#allocation5 + $0x618] sm:$0xff]  ;;  %v245_v19 = vld [vmem:[#allocation5 + $0x608] sm:$0xff] }
  0x58   :  { %500 = vmatpush.msrb.mxu2 %v239_v24  ;;  %461 = vmatpush.msra.mxu1 %v173_v29 }
  0x59   :  { %482 = vmatpush.msra.mxu3 %v203_v27  ;;  %442 = vmatpush.msra.mxu0 %v139_v30 }
  0x5a   :  { %501 = vmatpush.msrb.mxu2 %v237_v28  ;;  %462 = vmatpush.msra.mxu1 %v171_v33 }
  0x5b   :  { %483 = vmatpush.msra.mxu3 %v201_v31  ;;  %443 = vmatpush.msra.mxu0 %v137_v34 }
  0x5c   :  { %502 = vmatpush.msrb.mxu2 %v235_v32  ;;  %463 = vmatpush.msra.mxu1 %v169_v37 }
  0x5d   :  { %484 = vmatpush.msra.mxu3 %v199_v35  ;;  %444 = vmatpush.msra.mxu0 %v135_v38 }
  0x5e   :  { %503 = vmatpush.msrb.mxu2 %v233_v36  ;;  %464 = vmatpush.msra.mxu1 %v167_v41 }
  0x5f   :  { %485 = vmatpush.msra.mxu3 %v197_v39  ;;  %445 = vmatpush.msra.mxu0 %v133_v42 }
  0x60   :  { %504 = vmatpush.msrb.mxu2 %v231_v40  ;;  %465 = vmatpush.msra.mxu1 %v165_v45 }
  0x61   :  { %486 = vmatpush.msra.mxu3 %v195_v43  ;;  %446 = vmatpush.msra.mxu0 %v131_v46 }
  0x62   :  { %505 = vmatpush.msrb.mxu2 %v229_v44  ;;  %466 = vmatpush.msra.mxu1 %v163_v49 }
  0x63   :  { %487 = vmatpush.msra.mxu3 %v193_v47  ;;  %447 = vmatpush.msra.mxu0 %v129_v50 }
  0x64   :  { %506 = vmatpush.msrb.mxu2 %v227_v48  ;;  %467 = vmatpush.msra.mxu1 %v161_v53 }
  0x65   :  { %488 = vmatpush.msra.mxu3 %v191_v51  ;;  %448 = vmatpush.msra.mxu0 %v127_v54 }
  0x66   :  { %507 = vmatpush.msrb.mxu2 %v225_v52  ;;  %414 = vmatmul.f32.vlgmr.msrb.gmra.mxu3 %v678_v11  ;;  %v153_v11 = vld [vmem:[#allocation5 + $0x328] sm:$0xff] }
  0x67   :  { %489 = vmatpush.msra.mxu3 %v189_v55  ;;  %449 = vmatpush.msra.mxu0 %v125_v57 }
  0x68   :  { %508 = vmatpush.msrb.mxu2 %v223_v56  ;;  %468 = vmatpush.msra.mxu1 %v159_v58 }
  0x69   :  { %490 = vmatpush.msra.mxu3 %v187_v59  ;;  %434 = vmatmul.f32.vlgmr.msra.gmra.mxu2 %v685_v18  ;;  %v213_v18 = vld [vmem:[#allocation5 + $0x508] sm:$0xff] }
  0x6a   :  { %509 = vmatpush.msrb.mxu2 %v221_v60  ;;  %450 = vmatpush.msra.mxu0 %v123_v61 }
  0x6b   :  { %469 = vmatpush.msra.mxu1 %v157_v63  ;;  %491 = vmatpush.msra.mxu3 %v185_v0 }
  0x6c   :  { %510 = vmatpush.msrb.mxu2 %v219_v1  ;;  %451 = vmatpush.msra.mxu0 %v121_v2 }
  0x6d   :  { %470 = vmatpush.msra.mxu1 %v155_v4  ;;  %492 = vmatpush.msra.mxu3 %v183_v5 }
  0x6e   :  { %511 = vmatpush.msrb.mxu2 %v217_v7  ;;  %452 = vmatpush.msra.mxu0 %v119_v8 }
  0x6f   :  { %471 = vmatpush.msra.mxu1 %v153_v11  ;;  %493 = vmatpush.msra.mxu3 %v181_v10 }
  0x70   :  { %512 = vmatpush.msrb.mxu2 %v215_v13  ;;  %494 = vmatmul.f32.vlgmr.msra.gmra.mxu3 %v690_v3  ;;  %v248_v3 = vld [vmem:[%s714_s2] sm:$0x3]  ;;  %s649_s2 = smov [#allocation7]  }
  0x71   :  { %453 = vmatpush.msra.mxu0 %v117_v14  ;;  %472 = vmatpush.msra.mxu1 %v151_v15  ;;  %v250_v20 = vperm.slane %v248_v3, 0  ;;  %v251_v32 = vperm.slane %v248_v3, 1  ;;  %s547_s24 = sshll.u32 %s649_s2, 4  ;;  %s548_s24 = int_to_ptr.vmem [resolvable:$true] %s547_s24 }
  0x72   :  { %513 = vmatpush.msrb.mxu2 %v213_v18  ;;  %454 = vmatmul.f32.vlgmr.msra.gmra.mxu0 %v676_v6 }
  0x73   :  { %514 = vmatmul.f32.vlgmr.msrb.gmra.mxu2 %v695_v9  ;;  %532 = vmatpush.msrb.mxu0 %v247_v16 }
  0x74   :  { %473 = vmatpush.msra.mxu1 %v149_v17 }
  0x75   :  { %474 = vmatmul.f32.vlgmr.msra.gmra.mxu1 %v681_v12  ;;  %533 = vmatpush.msrb.mxu0 %v245_v19 }
  0x7a   :  { %561 = vmatmul.msk.f32.vlgmr.msrb.gmra.mxu0 %vm254_vm0, %v688_v62 }
  0xaf   :  { %v275_v21 = vpop.f32.mrf.mxu0 }
  0xb0   :  { %v276_v22 = vadd.f32 %v275_v21, %v250_v20 }
  0xb3   :  { %v295_v23 = vpop.f32.mrf.mxu1  ;;  %v315_v24 = vpop.f32.mrf.mxu2 }
  0xb4   :  { %v296_v6 = vadd.f32 %v295_v23, %v276_v22 }
  0xb6   :  { %v316_v25 = vadd.f32 %v315_v24, %v296_v6  ;;  %v335_v9 = vpop.f32.mrf.mxu3 }
  0xb8   :  { %v336_v26 = vadd.f32 %v335_v9, %v316_v25 }
  0xcb   :  { %v355_v27 = vpop.f32.mrf.mxu0 }
  0xcc   :  { %v356_v28 = vadd.f32 %v355_v27, %v336_v26 }
  0xce   :  { %v375_v12 = vpop.f32.mrf.mxu1 }
  0xcf   :  { %v376_v29 = vadd.f32 %v375_v12, %v356_v28  ;;  %v395_v30 = vpop.f32.mrf.mxu2 }
  0xd1   :  { %v396_v31 = vadd.f32 %v395_v30, %v376_v29 }
  0xd3   :  { %v538_v62 = vmax.f32 %v396_v31, 0.0 }
  0xd5   :  { %540 = vst [vmem:[#allocation7] sm:$0xff] %v538_v62 }
  0xe9   :  { %v415_v33 = vpop.f32.mrf.mxu3 }
  0xea   :  { %v416_v34 = vadd.f32 %v415_v33, %v251_v32 }
  0xec   :  { %v435_v35 = vpop.f32.mrf.mxu2 }
  0xed   :  { %v436_v36 = vadd.f32 %v435_v35, %v416_v34 }
  0xef   :  { %v455_v37 = vpop.f32.mrf.mxu0 }
  0xf0   :  { %v456_v38 = vadd.f32 %v455_v37, %v436_v36 }
  0xf2   :  { %v475_v39 = vpop.f32.mrf.mxu1 }
  0xf3   :  { %v476_v40 = vadd.f32 %v475_v39, %v456_v38  ;;  %v495_v41 = vpop.f32.mrf.mxu3 }
  0xf5   :  { %v496_v42 = vadd.f32 %v495_v41, %v476_v40 }
  0xf6   :  { %v515_v43 = vpop.f32.mrf.mxu2 }
  0xf7   :  { %v516_v44 = vadd.f32 %v515_v43, %v496_v42  ;;  %v535_v45 = vpop.f32.mrf.mxu0 }
  0xf9   :  { %v536_v46 = vadd.f32 %v535_v45, %v516_v44 }
  0xfb   :  { %v539_v47 = vmax.f32 %v536_v46, 0.0 }
  0xfd   :  { %541 = vst [vmem:[#allocation7 + $0x8] sm:$0xff] %v539_v47 }
  0xfe   :  { %552 = dma.vmem_to_hbm [thread:$0]  %s548_s24, 256, %s550_s27, [#allocation4]  }
  0xff   :  { %643 = dma.done.wait [#allocation4], 256  }
 0x100   :  { %644 = vsyncadd [#allocation4], 4294967040 }
 0x101   :  { %557 = vsyncpa [#allocation3], 1 }
 0x102   :  { %558 = vsyncpa [#allocation6], 1 }
 0x103   :  { %559 = vsyncpa [#allocation4], 1 }

</bundles_post_ra>
